<compile_context>
chip_gen: v6e
topology: v6e:2x2x1
jax: 0.10.0
libtpu: 0.0.40
codegen_flags: <defaults>
</compile_context>

<pallas_src>
import functools

import jax
import jax.numpy as jnp
from jax import lax
from jax.experimental import pallas as pl
from jax.experimental.pallas import tpu as pltpu


def _round_up(x: int, m: int) -> int:
    return ((x + m - 1) // m) * m


def _vmem_capacity_bytes() -> int:
    """Per-core VMEM capacity; conservative default (v7x = 64 MiB) if unknown."""
    try:
        return int(pltpu.get_tpu_info().vmem_capacity_bytes)
    except Exception:
        return 64 << 20


# ----------------------------------------------------------------------------
# Kernel A (table resident in VMEM): one grid step = one block of tokens.
#   idx_ref : VMEM (blk, 1) int32   -- token ids for this block
#   w_ref   : VMEM (N, D)           -- full embedding table (DMA'd once)
#   o_ref   : VMEM (blk, D)         -- dense output block
# Gather is a one-hot MXU matmul (MXU is otherwise idle); for large N the
# contraction is chunked so the one-hot never gets huge.
# ----------------------------------------------------------------------------
def _emb_onehot_kernel(idx_ref, w_ref, o_ref, *, scale, rows_chunk):
    ids = idx_ref[...]                                  # (blk, 1) int32
    blk = o_ref.shape[0]
    n_rows = w_ref.shape[0]

    def chunk_dot(start, size):
        iota = start + lax.broadcasted_iota(jnp.int32, (blk, size), 1)
        one_hot = (ids == iota).astype(jnp.float32)     # (blk, size)
        w_slab = w_ref[start:start + size, :].astype(jnp.float32)
        return jnp.dot(one_hot, w_slab,
                       preferred_element_type=jnp.float32,
                       precision=lax.Precision.HIGHEST)

    if n_rows <= rows_chunk:
        acc = chunk_dot(0, n_rows)
    else:
        acc = jnp.zeros((blk, o_ref.shape[1]), jnp.float32)
        for start in range(0, n_rows, rows_chunk):      # static, unrolled
            size = min(rows_chunk, n_rows - start)
            acc = acc + chunk_dot(start, size)

    o_ref[...] = (acc * scale).astype(o_ref.dtype)      # one dense store


def _build_resident_call(blk, Tp, N, D, out_dtype, scale, rows_chunk,
                         single_buffer_table, vmem_limit_bytes):
    if single_buffer_table:
        table_spec = pl.BlockSpec((N, D), lambda b: (0, 0),
                                  pipeline_mode=pl.Buffered(1))
    else:
        table_spec = pl.BlockSpec((N, D), lambda b: (0, 0))

    kernel = functools.partial(_emb_onehot_kernel, scale=scale,
                               rows_chunk=rows_chunk)
    return pl.pallas_call(
        kernel,
        out_shape=jax.ShapeDtypeStruct((Tp, D), out_dtype),
        grid_spec=pltpu.PrefetchScalarGridSpec(
            num_scalar_prefetch=0,
            grid=(Tp // blk,),
            in_specs=[pl.BlockSpec((blk, 1), lambda b: (b, 0)),   # token ids
                      table_spec],                                # full table
            out_specs=pl.BlockSpec((blk, D), lambda b: (b, 0)),
        ),
        compiler_params=pltpu.CompilerParams(
            dimension_semantics=("parallel",),          # v7x: split blocks
            vmem_limit_bytes=vmem_limit_bytes),
    )


# ----------------------------------------------------------------------------
# Kernel B (large tables / tiny token counts): blocked gather from HBM.
# One grid step gathers `blk` rows with per-row async DMAs into a VMEM
# scratch, then does one dense scaled store.  Single-slot scratch (issue+wait
# within the step) keeps it correct under "parallel" core sharding; the
# Pallas output pipeline still overlaps the writeback.
# ----------------------------------------------------------------------------
def _emb_hbm_gather_kernel(idx_ref, w_hbm, o_ref, rowbuf, sem, *, scale):
    blk = o_ref.shape[0]
    base = pl.program_id(0) * blk

    def issue(t, carry):
        row = idx_ref[base + t]                          # scalar SMEM read
        pltpu.make_async_copy(w_hbm.at[pl.ds(row, 1), :],
                              rowbuf.at[pl.ds(t, 1), :],
                              sem).start()
        return carry

    lax.fori_loop(0, blk, issue, 0, unroll=False)

    def wait(t, carry):
        row = idx_ref[base + t]
        pltpu.make_async_copy(w_hbm.at[pl.ds(row, 1), :],
                              rowbuf.at[pl.ds(t, 1), :],
                              sem).wait()
        return carry

    lax.fori_loop(0, blk, wait, 0, unroll=False)

    o_ref[...] = (rowbuf[...].astype(jnp.float32) * scale).astype(o_ref.dtype)


# ----------------------------------------------------------------------------
# Wrapper: ScaledEmbedding.forward
#   x      : integer indices, any shape
#   weight : (num_embeddings, embedding_dim) float   (already divided by
#            `scale` at init time, exactly as in the PyTorch constructor)
#   scale  : python float
# returns x.shape + (embedding_dim,) in weight.dtype
# ----------------------------------------------------------------------------
def scaled_embedding_forward(x, weight, scale, *, tok_block=128,
                             gather_block=128, rows_chunk=1024):
    orig_shape = x.shape
    N, D = weight.shape
    wdtype = weight.dtype                                # no silent upcast
    esize = jnp.dtype(wdtype).itemsize
    scale = float(scale)

    # Clamp indices: avoids un-checked VMEM OOB reads / invalid row DMAs.
    idx = jnp.clip(jnp.reshape(x, (-1,)).astype(jnp.int32), 0, N - 1)
    T = int(idx.shape[0])

    table_bytes = N * D * esize
    token_bytes = T * D * esize
    vmem_cap = _vmem_capacity_bytes()
    # Generation-aware resident-table budget (v7x 64MiB -> ~32MiB,
    # v5e/v6e 128MiB -> 48MiB cap), leaving room for output double buffers.
    budget = min(vmem_cap // 2, 48 << 20)
    # Embedding lookup is memory bound: if the table is much bigger than the
    # rows actually read, streaming the whole table into VMEM wastes HBM BW.
    prefer_gather = table_bytes > max(8 * token_bytes, 2 << 20)

    if table_bytes <= budget and not prefer_gather:
        # ---------------- resident-table fast path --------------------------
        blk = min(tok_block, _round_up(T, 8))
        Tp = _round_up(T, blk)
        idx2 = jnp.pad(idx, (0, Tp - T)).reshape(Tp, 1)  # pad w/ row 0 (valid)

        def run(single_buffer):
            bufs = 1 if single_buffer else 2
            need = bufs * table_bytes + 2 * blk * (D * esize + 4) + (8 << 20)
            vlim = int(min(max(need, 16 << 20), vmem_cap - (2 << 20)))
            return _build_resident_call(blk, Tp, N, D, wdtype, scale,
                                        rows_chunk, single_buffer,
                                        vlim)(idx2, weight)

        try:
            out = run(True)            # single-buffered resident table
        except Exception:
            out = run(False)           # fallback if Buffered(1) unsupported
        out = out[:T]
    else:
        # ---------------- blocked HBM row-gather path ------------------------
        blk = min(gather_block, _round_up(T, 8))
        Tp = _round_up(T, blk)
        idx_p = jnp.pad(idx, (0, Tp - T))

        kernel = functools.partial(_emb_hbm_gather_kernel, scale=scale)
        need = 3 * blk * D * esize + (8 << 20)           # rowbuf + 2x out buf
        vlim = int(min(max(need, 16 << 20), vmem_cap - (2 << 20)))
        out = pl.pallas_call(
            kernel,
            out_shape=jax.ShapeDtypeStruct((Tp, D), wdtype),
            grid_spec=pltpu.PrefetchScalarGridSpec(
                num_scalar_prefetch=1,                   # token ids -> SMEM
                grid=(Tp // blk,),
                in_specs=[pl.BlockSpec(memory_space=pl.ANY)],   # table in HBM
                out_specs=pl.BlockSpec((blk, D), lambda b, idx_ref: (b, 0)),
                scratch_shapes=[pltpu.VMEM((blk, D), wdtype),
                                pltpu.SemaphoreType.DMA(())],
            ),
            compiler_params=pltpu.CompilerParams(
                dimension_semantics=("parallel",),
                vmem_limit_bytes=vlim),
        )(idx_p, weight)
        out = out[:T]

    return out.reshape(orig_shape + (D,))


# ----------------------------------------------------------------------------
# Parameter init mirroring the PyTorch constructor:
#   nn.Embedding default init N(0,1); optional `smooth` cumulative smoothing;
#   weights divided by `scale` (forward multiplies back by `scale`).
# ----------------------------------------------------------------------------
def init_scaled_embedding(key, num_embeddings, embedding_dim,
                          scale=10.0, smooth=False):
    w = jax.random.normal(key, (num_embeddings, embedding_dim), jnp.float32)
    if smooth:
        w = jnp.cumsum(w, axis=0)
        w = w / jnp.sqrt(
            jnp.arange(1, num_embeddings + 1, dtype=jnp.float32))[:, None]
    w = w / scale
    return w


if __name__ == "__main__":
    NUM_EMB, DIM, SCALE = 64, 128, 10.0
    B, S = 2, 16

    key = jax.random.PRNGKey(0)
    kw, kx = jax.random.split(key)
    weight = init_scaled_embedding(kw, NUM_EMB, DIM, scale=SCALE, smooth=True)
    x = jax.random.randint(kx, (B, S), 0, NUM_EMB, dtype=jnp.int32)

    out = scaled_embedding_forward(x, weight, SCALE)
    jax.block_until_ready(out)

    ref = weight[x] * SCALE                              # pure-JAX reference
    assert out.shape == (B, S, DIM)
    assert bool(jnp.all(jnp.isfinite(out)))
    assert bool(jnp.allclose(out, ref, atol=1e-5, rtol=1e-5))
    print("KERNEL_OK")
</pallas_src>

<mosaic_0001>
module attributes {stable_mosaic.version = 11 : i64} {
  func.func @_emb_onehot_kernel(%arg0: i32, %arg1: memref<32x1xi32, #tpu.memory_space<vmem>>, %arg2: memref<64x128xf32, #tpu.memory_space<vmem>>, %arg3: memref<32x128xf32, #tpu.memory_space<vmem>>) attributes {dimension_semantics = [#tpu.dimension_semantics<parallel>], iteration_bounds = array<i64: 1>, scalar_prefetch = 0 : i64, scratch_operands = 0 : i64, tpu.core_type = #tpu.core_type<tc>, window_params = [{transform_indices = @transform_0, window_bounds = array<i64: 32, 1>}, {pipeline_mode = #tpu.pipeline_mode<synchronous>, transform_indices = @transform_1, window_bounds = array<i64: 64, 128>}, {transform_indices = @transform_2, window_bounds = array<i64: 32, 128>}]} {
    %c0 = arith.constant 0 : index
    %c0_0 = arith.constant 0 : index
    %0 = vector.load %arg1[%c0, %c0_0] : memref<32x1xi32, #tpu.memory_space<vmem>>, vector<32x1xi32>
    %1 = tpu.iota {dimensions = array<i32: 1>} : vector<32x64xi32>
    %c0_i32 = arith.constant 0 : i32
    %2 = vector.broadcast %c0_i32 : i32 to vector<32x64xi32>
    %3 = arith.addi %2, %1 : vector<32x64xi32>
    %4 = vector.broadcast %0 : vector<32x1xi32> to vector<32x64xi32>
    %5 = arith.cmpi eq, %4, %3 : vector<32x64xi32>
    %6 = arith.extui %5 : vector<32x64xi1> to vector<32x64xi32>
    %7 = arith.sitofp %6 : vector<32x64xi32> to vector<32x64xf32>
    %c0_1 = arith.constant 0 : index
    %c0_2 = arith.constant 0 : index
    %8 = vector.load %arg2[%c0_1, %c0_2] : memref<64x128xf32, #tpu.memory_space<vmem>>, vector<64x128xf32>
    %cst = arith.constant dense<0.000000e+00> : vector<32x128xf32>
    %9 = tpu.matmul %7, %8, %cst {dimension_numbers = #tpu.dot_dimension_numbers<[1], [0], [0], [1], [0, 0, 1, 1], [], []>, precision = #tpu.contract_precision<fp32>} : vector<32x64xf32>, vector<64x128xf32>, vector<32x128xf32> -> vector<32x128xf32>
    %cst_3 = arith.constant 1.000000e+01 : f32
    %10 = vector.broadcast %cst_3 : f32 to vector<32x128xf32>
    %11 = arith.mulf %9, %10 : vector<32x128xf32>
    %c0_4 = arith.constant 0 : index
    %c0_5 = arith.constant 0 : index
    %12 = vector.load %arg3[%c0_4, %c0_5] : memref<32x128xf32, #tpu.memory_space<vmem>>, vector<32x128xf32>
    tpu.vector_store %arg3[%c0_4, %c0_5], %11 {strides = array<i32>} : memref<32x128xf32, #tpu.memory_space<vmem>>, vector<32x128xf32>,
    return
  }
  func.func @transform_0(%arg0: i32) -> (i32, i32) {
    %c0_i32 = arith.constant 0 : i32
    %c0_i32_0 = arith.constant 0 : i32
    return %arg0, %c0_i32 : i32, i32
  }
  func.func @transform_1(%arg0: i32) -> (i32, i32) {
    %c0_i32 = arith.constant 0 : i32
    %c0_i32_0 = arith.constant 0 : i32
    %c0_i32_1 = arith.constant 0 : i32
    return %c0_i32, %c0_i32_0 : i32, i32
  }
  func.func @transform_2(%arg0: i32) -> (i32, i32) {
    %c0_i32 = arith.constant 0 : i32
    %c0_i32_0 = arith.constant 0 : i32
    return %arg0, %c0_i32 : i32, i32
  }
}

module attributes {stable_mosaic.version = 11 : i64} {
  func.func @_emb_onehot_kernel(%arg0: i32, %arg1: memref<32x1xi32, #tpu.memory_space<vmem>>, %arg2: memref<64x128xf32, #tpu.memory_space<vmem>>, %arg3: memref<32x128xf32, #tpu.memory_space<vmem>>) attributes {dimension_semantics = [#tpu.dimension_semantics<parallel>], iteration_bounds = array<i64: 1>, scalar_prefetch = 0 : i64, scratch_operands = 0 : i64, tpu.core_type = #tpu.core_type<tc>, window_params = [{transform_indices = @transform_0, window_bounds = array<i64: 32, 1>}, {pipeline_mode = #tpu.pipeline_mode<synchronous>, transform_indices = @transform_1, window_bounds = array<i64: 64, 128>}, {transform_indices = @transform_2, window_bounds = array<i64: 32, 128>}]} {
    %c0 = arith.constant 0 : index
    %c0_0 = arith.constant 0 : index
    %0 = vector.load %arg1[%c0, %c0_0] : memref<32x1xi32, #tpu.memory_space<vmem>>, vector<32x1xi32>
    %1 = tpu.iota {dimensions = array<i32: 1>} : vector<32x64xi32>
    %c0_i32 = arith.constant 0 : i32
    %2 = vector.broadcast %c0_i32 : i32 to vector<32x64xi32>
    %3 = arith.addi %2, %1 : vector<32x64xi32>
    %4 = vector.broadcast %0 : vector<32x1xi32> to vector<32x64xi32>
    %5 = arith.cmpi eq, %4, %3 : vector<32x64xi32>
    %6 = arith.extui %5 : vector<32x64xi1> to vector<32x64xi32>
    %7 = arith.sitofp %6 : vector<32x64xi32> to vector<32x64xf32>
    %c0_1 = arith.constant 0 : index
    %c0_2 = arith.constant 0 : index
    %8 = vector.load %arg2[%c0_1, %c0_2] : memref<64x128xf32, #tpu.memory_space<vmem>>, vector<64x128xf32>
    %cst = arith.constant dense<0.000000e+00> : vector<32x128xf32>
    %9 = tpu.matmul %7, %8, %cst {dimension_numbers = #tpu.dot_dimension_numbers<[1], [0], [0], [1], [0, 0, 1, 1], [], []>, precision = #tpu.contract_precision<fp32>} : vector<32x64xf32>, vector<64x128xf32>, vector<32x128xf32> -> vector<32x128xf32>
    %cst_3 = arith.constant 1.000000e+01 : f32
    %10 = vector.broadcast %cst_3 : f32 to vector<32x128xf32>
    %11 = arith.mulf %9, %10 : vector<32x128xf32>
    %c0_4 = arith.constant 0 : index
    %c0_5 = arith.constant 0 : index
    %12 = vector.load %arg3[%c0_4, %c0_5] : memref<32x128xf32, #tpu.memory_space<vmem>>, vector<32x128xf32>
    tpu.vector_store %arg3[%c0_4, %c0_5], %11 {strides = array<i32>} : memref<32x128xf32, #tpu.memory_space<vmem>>, vector<32x128xf32>,
    return
  }
  func.func @transform_0(%arg0: i32) -> (i32, i32) {
    %c0_i32 = arith.constant 0 : i32
    %c0_i32_0 = arith.constant 0 : i32
    return %arg0, %c0_i32 : i32, i32
  }
  func.func @transform_1(%arg0: i32) -> (i32, i32) {
    %c0_i32 = arith.constant 0 : i32
    %c0_i32_0 = arith.constant 0 : i32
    %c0_i32_1 = arith.constant 0 : i32
    return %c0_i32, %c0_i32_0 : i32, i32
  }
  func.func @transform_2(%arg0: i32) -> (i32, i32) {
    %c0_i32 = arith.constant 0 : i32
    %c0_i32_0 = arith.constant 0 : i32
    return %arg0, %c0_i32 : i32, i32
  }
}

</mosaic_0001>

<bundles_post_ra>
// kernel: tpu_custom_call.1
= control target key start
LH: loop header
LB: loop body
LE: loop exit
PB: predicated region body
PF: predicated region fallthrough
CT: control target
= control target key end

     0   :  { %7 = vsyncpa [#allocation3], 0  ;;  %s1300_s0 = inlined_call_operand.vmem [shape: s32[32,1], index: 0, kind: input, shape index: {}]   ;;  %s1301_s1 = inlined_call_operand.hbm [shape: f32[64,128], index: 1, kind: input, shape index: {}]   ;;  %s1302_s2 = inlined_call_operand.hbm [shape: f32[32,128], index: 2, kind: output, shape index: {}]  }
   0x1   :  { %8 = vsyncpa [#allocation4], 0  ;;  %s1040_s9 = smov [#allocation2]  }
   0x2   :  { %s16_s10 = sshll.u32 %s1040_s9, 4  ;;  %s17_s10 = int_to_ptr.vmem [resolvable:$true] %s16_s10 }
   0x3   :  { %s1004_s11 = scalar_lea.vmem %s17_s10, 1024  ;;  %p1009_p1 = scmp.lt.s32.totalorder %s17_s10, %s17_s10 }
   0x4   :  { %p1005_p0 = scmp.ne.s32.totalorder %s17_s10, %s1004_s11  ;;  %p1010_p2 = scmp.lt.s32.totalorder %s1004_s11, %s1004_s11 }
   0x6   :  { %p1011_p3 = por %p1010_p2, %p1009_p1 }
   0x8   :  { %p1012_p4 = pnand %p1011_p3, %p1005_p0 }
   0xa   :  { %1015 = shalt.err (!%p1012_p4)
}
   0xb   :  { %s1041_s12 = smov 128   ;;  %s1042_s13 = smov 8  }
   0xc   :  { %22 = dma.hbm_to_vmem [thread:$0]  %s1301_s1, 1024, %s17_s10, [#allocation3], %s1041_s12, %s1041_s12, %s1042_s13  }
   0xd   :  { %1036 = dma.done.wait [#allocation3], 1024  }
   0xe   :  { %1037 = vsyncadd [#allocation3], 4294966272  ;;  %v1043_v0 = vmov 0   ;;  %v26_v1 = vld [vmem:[%s1300_s0] sm:$0xff]  ;;  %v28_v2 = vld [vmem:[%s1300_s0 + $0x10] sm:$0xff]  ;;  %v30_v53 = vlaneseq  ;;  %vm64_vm0 = vcmask 523264  }
   0xf   :  { %994 = vset.pattern.permute.xlu0 %v1043_v0  ;;  %995 = vset.pattern.permute.xlu1 %v1043_v0  ;;  %v27_v3 = vld [vmem:[%s1300_s0 + $0x8] sm:$0xff]  ;;  %v29_v4 = vld [vmem:[%s1300_s0 + $0x18] sm:$0xff]  ;;  %v62_v6 = vld [vmem:[#allocation2 + $0x30] sm:$0xff]  ;;  %v1044_v57 = vmov 0.0   ;;  %s1045_s0 = smov [#allocation5]  }
  0x10   :  { %33 = vperm.xlu0 %994, %v26_v1   ;;  %39 = vperm.xlu1 %995, %v28_v2   ;;  %v63_v5 = vld [vmem:[#allocation2 + $0x38] sm:$0xff]  ;;  %v1081_v8 = vand.u32 4294901760, %v62_v6  ;;  %v61_v9 = vld [vmem:[#allocation2 + $0x28] sm:$0xff]  ;;  %v60_v10 = vld [vmem:[#allocation2 + $0x20] sm:$0xff]  ;;  %v31_v54 = vand.u32 127, %v30_v53  ;;  %s756_s23 = sshll.u32 %s1045_s0, 4  ;;  %s757_s23 = int_to_ptr.vmem [resolvable:$true] %s756_s23 }
  0x11   :  { %v1079_v7 = vand.u32 4294901760, %v63_v5  ;;  %v59_v11 = vld [vmem:[#allocation2 + $0x18] sm:$0xff]  ;;  %v1083_v12 = vand.u32 4294901760, %v61_v9  ;;  %v1085_v13 = vand.u32 4294901760, %v60_v10  ;;  %v58_v15 = vld [vmem:[#allocation2 + $0x10] sm:$0xff]  ;;  %v57_v16 = vld [vmem:[#allocation2 + $0x8] sm:$0xff]  ;;  %p1021_p6 = scmp.lt.s32.totalorder %s757_s23, %s757_s23 }
  0x12   :  { %v1087_v14 = vand.u32 4294901760, %v59_v11  ;;  %v56_v17 = vld [vmem:[#allocation2] sm:$0xff]  ;;  %v1093_v19 = vsub.f32 %v62_v6, %v1081_v8  ;;  %v1096_v20 = vand.u32 4294901760, %v58_v15  ;;  %v1098_v21 = vand.u32 4294901760, %v57_v16  ;;  %s1016_s24 = scalar_lea.vmem %s757_s23, 512 }
  0x13   :  { %v1090_v18 = vsub.f32 %v63_v5, %v1079_v7  ;;  %856 = vmatprep.subr.mxu0 %v1079_v7  ;;  %v1101_v22 = vsub.f32 %v61_v9, %v1083_v12  ;;  %v1104_v23 = vsub.f32 %v60_v10, %v1085_v13  ;;  %v1109_v25 = vand.u32 4294901760, %v56_v17  ;;  %p1017_p5 = scmp.ne.s32.totalorder %s757_s23, %s1016_s24  ;;  %p1022_p7 = scmp.lt.s32.totalorder %s1016_s24, %s1016_s24 }
  0x14   :  { %36 = vperm.xlu0 %994, %v27_v3   ;;  %42 = vperm.xlu1 %995, %v29_v4   ;;  %v1107_v24 = vsub.f32 %v59_v11, %v1087_v14  ;;  %v1115_v27 = vand.u32 4294901760, %v1093_v19  ;;  %v1119_v28 = vsub.f32 %v58_v15, %v1096_v20  ;;  %v1137_v34 = vsub.f32 %v57_v16, %v1098_v21 }
  0x15   :  { %v1112_v26 = vand.u32 4294901760, %v1090_v18  ;;  %857 = vmatpush3.msra.mxu0 %v1079_v7  ;;  %v1122_v29 = vand.u32 4294901760, %v1101_v22  ;;  %v1125_v30 = vand.u32 4294901760, %v1104_v23  ;;  %v1143_v36 = vsub.f32 %v56_v17, %v1109_v25  ;;  %p1023_p8 = por %p1022_p7, %p1021_p6 }
  0x16   :  { %858 = vmatprep.subr.mxu0 %v1081_v8  ;;  %v217_v32 = vsub.f32 %v1093_v19, %v1115_v27  ;;  %v1133_v33 = vand.u32 4294901760, %v1107_v24  ;;  %v1148_v40 = vand.u32 4294901760, %v1119_v28  ;;  %v1155_v43 = vand.u32 4294901760, %v1137_v34 }
  0x17   :  { %v210_v31 = vsub.f32 %v1090_v18, %v1112_v26  ;;  %859 = vmatpush3.msra.mxu0 %v1081_v8  ;;  %v224_v35 = vsub.f32 %v1101_v22, %v1122_v29  ;;  %v231_v39 = vsub.f32 %v1104_v23, %v1125_v30  ;;  %v1162_v46 = vand.u32 4294901760, %v1143_v36  ;;  %p1024_p9 = pnand %p1023_p8, %p1017_p5 }
  0x18   :  { %860 = vmatprep.subr.mxu0 %v1083_v12  ;;  %v218_v38 = vand.u32 4294901760, %v217_v32  ;;  %v238_v42 = vsub.f32 %v1107_v24, %v1133_v33  ;;  %v245_v45 = vsub.f32 %v1119_v28, %v1148_v40  ;;  %v252_v48 = vsub.f32 %v1137_v34, %v1155_v43 }
  0x19   :  { %v211_v37 = vand.u32 4294901760, %v210_v31  ;;  %861 = vmatpush3.msra.mxu0 %v1083_v12  ;;  %v225_v41 = vand.u32 4294901760, %v224_v35  ;;  %v232_v44 = vand.u32 4294901760, %v231_v39  ;;  %v259_v50 = vsub.f32 %v1143_v36, %v1162_v46 }
  0x1a   :  { %862 = vmatprep.subr.mxu0 %v1085_v13  ;;  %v239_v47 = vand.u32 4294901760, %v238_v42  ;;  %v246_v49 = vand.u32 4294901760, %v245_v45  ;;  %v253_v51 = vand.u32 4294901760, %v252_v48 }
  0x1b   :  { %878 = vmatprep.subr.mxu1 %v211_v37  ;;  %863 = vmatpush3.msra.mxu0 %v1085_v13  ;;  %v260_v52 = vand.u32 4294901760, %v259_v50 }
  0x1c   :  { %879 = vmatpush3.msra.mxu1 %v211_v37  ;;  %864 = vmatprep.subr.mxu0 %v1087_v14 }
  0x1d   :  { %880 = vmatprep.subr.mxu1 %v218_v38  ;;  %865 = vmatpush3.msra.mxu0 %v1087_v14 }
  0x1e   :  { %881 = vmatpush3.msra.mxu1 %v218_v38  ;;  %866 = vmatprep.subr.mxu0 %v1096_v20 }
  0x1f   :  { %882 = vmatprep.subr.mxu1 %v225_v41  ;;  %867 = vmatpush3.msra.mxu0 %v1096_v20 }
  0x20   :  { %883 = vmatpush3.msra.mxu1 %v225_v41  ;;  %868 = vmatprep.subr.mxu0 %v1098_v21 }
  0x21   :  { %884 = vmatprep.subr.mxu1 %v232_v44  ;;  %869 = vmatpush3.msra.mxu0 %v1098_v21 }
  0x22   :  { %885 = vmatpush3.msra.mxu1 %v232_v44  ;;  %870 = vmatprep.subr.mxu0 %v1109_v25 }
  0x23   :  { %886 = vmatprep.subr.mxu1 %v239_v47  ;;  %871 = vmatpush3.msra.mxu0 %v1109_v25 }
  0x24   :  { %887 = vmatpush3.msra.mxu1 %v239_v47  ;;  %900 = vmatprep.subr.mxu0 %v1090_v18 }
  0x25   :  { %888 = vmatprep.subr.mxu1 %v246_v49 }
  0x26   :  { %889 = vmatpush3.msra.mxu1 %v246_v49 }
  0x27   :  { %890 = vmatprep.subr.mxu1 %v253_v51 }
  0x28   :  { %891 = vmatpush3.msra.mxu1 %v253_v51 }
  0x29   :  { %892 = vmatprep.subr.mxu1 %v260_v52 }
  0x2a   :  { %893 = vmatpush3.msra.mxu1 %v260_v52 }
  0x2b   :  { %922 = vmatprep.subr.mxu1 %v1079_v7 }
  0x8b   :  { %v34_v55 = vpop.permute.xlu0 %33  ;;  %v40_v56 = vpop.permute.xlu1 %39 }
  0x8c   :  { %vm44_vm1 = vcmp.eq.s32.totalorder %v34_v55, %v31_v54  ;;  %vm46_vm2 = vcmp.eq.s32.totalorder %v40_v56, %v31_v54 }
  0x8d   :  { %v1177_v58 = vsel %vm44_vm1, 1.0, %v1044_v57  ;;  %v1179_v59 = vsel %vm46_vm2, 1.0, %v1044_v57 }
  0x8e   :  { %894 = vmatprep.mubr.msk.f32.mxu1 %vm64_vm0, %v1177_v58  ;;  %v72_v60 = vsel %vm64_vm0, %v1179_v59, 0  ;;  %v66_v61 = vsel %vm64_vm0, %v1177_v58, 0 }
  0x8f   :  { %v1187_v62 = vsub.f32 %v72_v60, %v72_v60  ;;  %v37_v63 = vpop.permute.xlu0 %36  ;;  %v43_v0 = vpop.permute.xlu1 %42  ;;  %v151_v1 = vsub.f32 %v66_v61, %v66_v61 }
  0x90   :  { %vm45_vm3 = vcmp.eq.s32.totalorder %v37_v63, %v31_v54  ;;  %vm47_vm4 = vcmp.eq.s32.totalorder %v43_v0, %v31_v54 }
  0x91   :  { %v1189_v2 = vsel %vm45_vm3, 1.0, %v1044_v57  ;;  %v1191_v3 = vsel %vm47_vm4, 1.0, %v1044_v57  ;;  %v152_v4 = vand.u32 4294901760, %v151_v1  ;;  %v172_v15 = vand.u32 4294901760, %v1187_v62 }
  0x92   :  { %v69_v5 = vsel %vm64_vm0, %v1189_v2, 0  ;;  %895 = vmatmul.mubr.msk.f32.vlgmr.msra.gmra.mxu1 %vm64_vm0, %v1189_v2  ;;  %v75_v6 = vsel %vm64_vm0, %v1191_v3, 0 }
  0x93   :  { %v1199_v9 = vsub.f32 %v69_v5, %v69_v5  ;;  %923 = vmatpush3.msra.mxu1 %v1079_v7  ;;  %v1202_v10 = vsub.f32 %v75_v6, %v75_v6  ;;  %897 = vmatprep.mubr.msk.f32.mxu1 %vm64_vm0, %v1179_v59  ;;  %v153_v11 = vsub.f32 %v151_v1, %v152_v4 }
  0x94   :  { %924 = vmatprep.subr.mxu1 %v1081_v8  ;;  %v173_v35 = vsub.f32 %v1187_v62, %v172_v15 }
  0x95   :  { %925 = vmatpush3.msra.mxu1 %v1081_v8  ;;  %v154_v16 = vand.u32 4294901760, %v153_v11  ;;  %v162_v17 = vand.u32 4294901760, %v1199_v9  ;;  %v182_v31 = vand.u32 4294901760, %v1202_v10 }
  0x96   :  { %926 = vmatprep.subr.mxu1 %v1083_v12  ;;  %898 = vmatmul.mubr.msk.f32.gmra.mxu1 %vm64_vm0, %v1191_v3  ;;  %v174_v39 = vand.u32 4294901760, %v173_v35 }
  0x97   :  { %927 = vmatpush3.msra.mxu1 %v1083_v12  ;;  %872 = vmatprep.mubr.f32.mxu0 %v154_v16  ;;  %v163_v32 = vsub.f32 %v1199_v9, %v162_v17  ;;  %v183_v37 = vsub.f32 %v1202_v10, %v182_v31 }
  0x98   :  { %928 = vmatprep.subr.mxu1 %v1085_v13  ;;  %938 = vmatprep.mubr.f32.mxu1 %v152_v4 }
  0x99   :  { %929 = vmatpush3.msra.mxu1 %v1085_v13  ;;  %v164_v38 = vand.u32 4294901760, %v163_v32  ;;  %v184_v41 = vand.u32 4294901760, %v183_v37 }
  0x9a   :  { %930 = vmatprep.subr.mxu1 %v1087_v14 }
  0x9b   :  { %931 = vmatpush3.msra.mxu1 %v1087_v14  ;;  %873 = vmatmul.mubr.f32.vlgmr.msra.gmra.mxu0 %v164_v38 }
  0x9c   :  { %901 = vmatpush3.msra.mxu0 %v1090_v18  ;;  %932 = vmatprep.subr.mxu1 %v1096_v20 }
  0x9d   :  { %902 = vmatprep.subr.mxu0 %v1093_v19  ;;  %933 = vmatpush3.msra.mxu1 %v1096_v20 }
  0x9e   :  { %903 = vmatpush3.msra.mxu0 %v1093_v19  ;;  %934 = vmatprep.subr.mxu1 %v1098_v21 }
  0x9f   :  { %875 = vmatprep.mubr.f32.mxu0 %v174_v39  ;;  %904 = vmatprep.subr.mxu0 %v1101_v22 }
  0xa0   :  { %935 = vmatpush3.msra.mxu1 %v1098_v21  ;;  %876 = vmatmul.mubr.f32.gmra.mxu0 %v184_v41 }
  0xa1   :  { %905 = vmatpush3.msra.mxu0 %v1101_v22  ;;  %936 = vmatprep.subr.mxu1 %v1109_v25 }
  0xa2   :  { %906 = vmatprep.subr.mxu0 %v1104_v23  ;;  %916 = vmatprep.mubr.f32.mxu0 %v151_v1 }
  0xa3   :  { %937 = vmatpush3.msra.mxu1 %v1109_v25  ;;  %907 = vmatpush3.msra.mxu0 %v1104_v23 }
  0xa4   :  { %939 = vmatmul.mubr.f32.vlgmr.msra.gmra.mxu1 %v162_v17  ;;  %966 = vmatprep.subr.mxu1 %v1079_v7 }
  0xa5   :  { %908 = vmatprep.subr.mxu0 %v1107_v24  ;;  %941 = vmatprep.mubr.f32.mxu1 %v172_v15 }
  0xa6   :  { %967 = vmatpush3.msra.mxu1 %v1079_v7  ;;  %909 = vmatpush3.msra.mxu0 %v1107_v24 }
  0xa7   :  { %968 = vmatprep.subr.mxu1 %v1081_v8  ;;  %910 = vmatprep.subr.mxu0 %v1119_v28 }
  0xa8   :  { %969 = vmatpush3.msra.mxu1 %v1081_v8  ;;  %911 = vmatpush3.msra.mxu0 %v1119_v28 }
  0xa9   :  { %942 = vmatmul.mubr.f32.gmra.mxu1 %v182_v31  ;;  %970 = vmatprep.subr.mxu1 %v1083_v12 }
  0xaa   :  { %912 = vmatprep.subr.mxu0 %v1137_v34  ;;  %971 = vmatpush3.msra.mxu1 %v1083_v12 }
  0xab   :  { %982 = vmatprep.mubr.msk.f32.mxu1 %vm64_vm0, %v1177_v58  ;;  %913 = vmatpush3.msra.mxu0 %v1137_v34 }
  0xac   :  { %972 = vmatprep.subr.mxu1 %v1085_v13  ;;  %914 = vmatprep.subr.mxu0 %v1143_v36 }
  0xad   :  { %973 = vmatpush3.msra.mxu1 %v1085_v13  ;;  %915 = vmatpush3.msra.mxu0 %v1143_v36 }
  0xae   :  { %974 = vmatprep.subr.mxu1 %v1087_v14  ;;  %917 = vmatmul.mubr.f32.vlgmr.msra.gmra.mxu0 %v1199_v9 }
  0xaf   :  { %944 = vmatprep.subr.mxu0 %v1112_v26  ;;  %975 = vmatpush3.msra.mxu1 %v1087_v14 }
  0xb0   :  { %919 = vmatprep.mubr.f32.mxu0 %v1187_v62  ;;  %945 = vmatpush3.msra.mxu0 %v1112_v26 }
  0xb1   :  { %976 = vmatprep.subr.mxu1 %v1096_v20  ;;  %946 = vmatprep.subr.mxu0 %v1115_v27 }
  0xb2   :  { %977 = vmatpush3.msra.mxu1 %v1096_v20  ;;  %947 = vmatpush3.msra.mxu0 %v1115_v27 }
  0xb3   :  { %978 = vmatprep.subr.mxu1 %v1098_v21  ;;  %920 = vmatmul.mubr.f32.gmra.mxu0 %v1202_v10 }
  0xb4   :  { %948 = vmatprep.subr.mxu0 %v1122_v29  ;;  %979 = vmatpush3.msra.mxu1 %v1098_v21 }
  0xb5   :  { %949 = vmatpush3.msra.mxu0 %v1122_v29  ;;  %960 = vmatprep.mubr.msk.f32.mxu0 %vm64_vm0, %v1177_v58 }
  0xb6   :  { %980 = vmatprep.subr.mxu1 %v1109_v25  ;;  %950 = vmatprep.subr.mxu0 %v1125_v30 }
  0xb7   :  { %981 = vmatpush3.msra.mxu1 %v1109_v25  ;;  %951 = vmatpush3.msra.mxu0 %v1125_v30 }
  0xb8   :  { %983 = vmatmul.mubr.msk.f32.vlgmr.msra.gmra.mxu1 %vm64_vm0, %v1189_v2  ;;  %952 = vmatprep.subr.mxu0 %v1133_v33 }
  0xb9   :  { %985 = vmatprep.mubr.msk.f32.mxu1 %vm64_vm0, %v1179_v59  ;;  %953 = vmatpush3.msra.mxu0 %v1133_v33 }
  0xba   :  { %954 = vmatprep.subr.mxu0 %v1148_v40 }
  0xbb   :  { %955 = vmatpush3.msra.mxu0 %v1148_v40 }
  0xbc   :  { %986 = vmatmul.mubr.msk.f32.gmra.mxu1 %vm64_vm0, %v1191_v3  ;;  %956 = vmatprep.subr.mxu0 %v1155_v43 }
  0xbd   :  { %957 = vmatpush3.msra.mxu0 %v1155_v43 }
  0xbe   :  { %958 = vmatprep.subr.mxu0 %v1162_v46 }
  0xbf   :  { %959 = vmatpush3.msra.mxu0 %v1162_v46 }
  0xc0   :  { %961 = vmatmul.mubr.msk.f32.vlgmr.msra.gmra.mxu0 %vm64_vm0, %v1189_v2 }
  0xc1   :  { %963 = vmatprep.mubr.msk.f32.mxu0 %vm64_vm0, %v1179_v59 }
  0xc4   :  { %964 = vmatmul.mubr.msk.f32.gmra.mxu0 %vm64_vm0, %v1191_v3 }
 0x152   :  { %v896_v7 = vpop.f32.mrf.mxu1 }
 0x154   :  { %v297_v12 = vpop.f32.mrf.mxu1 }
 0x156   :  { %v899_v13 = vpop.f32.mrf.mxu1 }
 0x158   :  { %v309_v18 = vpop.f32.mrf.mxu1 }
 0x15b   :  { %v874_v8 = vpop.f32.mrf.mxu0 }
 0x15c   :  { %v304_v26 = vadd.f32 %v896_v7, %v874_v8 }
 0x15d   :  { %v156_v14 = vpop.f32.mrf.mxu0 }
 0x15e   :  { %v298_v29 = vadd.f32 %v297_v12, %v156_v14 }
 0x160   :  { %v877_v19 = vpop.f32.mrf.mxu0 }
 0x161   :  { %v316_v34 = vadd.f32 %v899_v13, %v877_v19 }
 0x162   :  { %v176_v21 = vpop.f32.mrf.mxu0 }
 0x163   :  { %v310_v42 = vadd.f32 %v309_v18, %v176_v21 }
 0x164   :  { %v940_v20 = vpop.f32.mrf.mxu1 }
 0x166   :  { %v505_v22 = vpop.f32.mrf.mxu1 }
 0x169   :  { %v943_v24 = vpop.f32.mrf.mxu1 }
 0x16b   :  { %v521_v27 = vpop.f32.mrf.mxu1 }
 0x16e   :  { %v918_v23 = vpop.f32.mrf.mxu0 }
 0x16f   :  { %v411_v30 = vadd.f32 %v918_v23, %v304_v26 }
 0x170   :  { %v403_v25 = vpop.f32.mrf.mxu0 }
 0x171   :  { %v404_v36 = vadd.f32 %v403_v25, %v298_v29  ;;  %v514_v44 = vadd.f32 %v940_v20, %v411_v30 }
 0x173   :  { %v921_v28 = vpop.f32.mrf.mxu0  ;;  %v506_v49 = vadd.f32 %v505_v22, %v404_v36 }
 0x174   :  { %v425_v43 = vadd.f32 %v921_v28, %v316_v34 }
 0x175   :  { %v417_v40 = vpop.f32.mrf.mxu0 }
 0x176   :  { %v418_v47 = vadd.f32 %v417_v40, %v310_v42  ;;  %v530_v53 = vadd.f32 %v943_v24, %v425_v43 }
 0x178   :  { %v984_v33 = vpop.f32.mrf.mxu1  ;;  %v522_v59 = vadd.f32 %v521_v27, %v418_v47 }
 0x17a   :  { %v721_v45 = vpop.f32.mrf.mxu1 }
 0x17c   :  { %v987_v54 = vpop.f32.mrf.mxu1 }
 0x17e   :  { %v733_v0 = vpop.f32.mrf.mxu1 }
 0x180   :  { %v962_v46 = vpop.f32.mrf.mxu0 }
 0x181   :  { %v631_v48 = vadd.f32 %v962_v46, %v514_v44 }
 0x182   :  { %v624_v50 = vpop.f32.mrf.mxu0 }
 0x183   :  { %v728_v51 = vadd.f32 %v984_v33, %v631_v48  ;;  %v625_v52 = vadd.f32 %v624_v50, %v506_v49 }
 0x184   :  { %v965_v55 = vpop.f32.mrf.mxu0 }
 0x185   :  { %v744_v56 = vmul.f32 10.0, %v728_v51  ;;  %v722_v57 = vadd.f32 %v721_v45, %v625_v52  ;;  %v643_v58 = vadd.f32 %v965_v55, %v530_v53 }
 0x186   :  { %v636_v60 = vpop.f32.mrf.mxu0 }
 0x187   :  { %748 = vst [vmem:[#allocation5 + $0x8] sm:$0xff] %v744_v56  ;;  %v743_v61 = vmul.f32 10.0, %v722_v57  ;;  %v740_v62 = vadd.f32 %v987_v54, %v643_v58  ;;  %v637_v63 = vadd.f32 %v636_v60, %v522_v59 }
 0x189   :  { %747 = vst [vmem:[#allocation5] sm:$0xff] %v743_v61  ;;  %v746_v1 = vmul.f32 10.0, %v740_v62  ;;  %v734_v2 = vadd.f32 %v733_v0, %v637_v63 }
 0x18b   :  { %750 = vst [vmem:[#allocation5 + $0x18] sm:$0xff] %v746_v1  ;;  %v745_v3 = vmul.f32 10.0, %v734_v2 }
 0x18d   :  { %749 = vst [vmem:[#allocation5 + $0x10] sm:$0xff] %v745_v3 }
 0x18e   :  { %1027 = shalt.err (!%p1024_p9)
}
 0x18f   :  { %762 = dma.vmem_to_hbm [thread:$0]  %s757_s23, 512, %s1302_s2, [#allocation4], %s1041_s12, %s1041_s12, %s1042_s13  }
 0x190   :  { %1038 = dma.done.wait [#allocation4], 512  }
 0x191   :  { %1039 = vsyncadd [#allocation4], 4294966784 }
 0x192   :  { %766 = vsyncpa [#allocation3], 1 }
 0x193   :  { %767 = vsyncpa [#allocation4], 1 }

// kernel: tpu_custom_call.1
= control target key start
LH: loop header
LB: loop body
LE: loop exit
PB: predicated region body
PF: predicated region fallthrough
CT: control target
= control target key end

     0   :  { %7 = vsyncpa [#allocation3], 0  ;;  %s1300_s0 = inlined_call_operand.vmem [shape: s32[32,1], index: 0, kind: input, shape index: {}]   ;;  %s1301_s1 = inlined_call_operand.hbm [shape: f32[64,128], index: 1, kind: input, shape index: {}]   ;;  %s1302_s2 = inlined_call_operand.hbm [shape: f32[32,128], index: 2, kind: output, shape index: {}]  }
   0x1   :  { %8 = vsyncpa [#allocation4], 0  ;;  %s1040_s9 = smov [#allocation2]  }
   0x2   :  { %s16_s10 = sshll.u32 %s1040_s9, 4  ;;  %s17_s10 = int_to_ptr.vmem [resolvable:$true] %s16_s10 }
   0x3   :  { %s1004_s11 = scalar_lea.vmem %s17_s10, 1024  ;;  %p1009_p1 = scmp.lt.s32.totalorder %s17_s10, %s17_s10 }
   0x4   :  { %p1005_p0 = scmp.ne.s32.totalorder %s17_s10, %s1004_s11  ;;  %p1010_p2 = scmp.lt.s32.totalorder %s1004_s11, %s1004_s11 }
   0x6   :  { %p1011_p3 = por %p1010_p2, %p1009_p1 }
   0x8   :  { %p1012_p4 = pnand %p1011_p3, %p1005_p0 }
   0xa   :  { %1015 = shalt.err (!%p1012_p4)
}
   0xb   :  { %s1041_s12 = smov 128   ;;  %s1042_s13 = smov 8  }
   0xc   :  { %22 = dma.hbm_to_vmem [thread:$0]  %s1301_s1, 1024, %s17_s10, [#allocation3], %s1041_s12, %s1041_s12, %s1042_s13  }
   0xd   :  { %1036 = dma.done.wait [#allocation3], 1024  }
   0xe   :  { %1037 = vsyncadd [#allocation3], 4294966272  ;;  %v1043_v0 = vmov 0   ;;  %v26_v1 = vld [vmem:[%s1300_s0] sm:$0xff]  ;;  %v28_v2 = vld [vmem:[%s1300_s0 + $0x10] sm:$0xff]  ;;  %v30_v53 = vlaneseq  ;;  %vm64_vm0 = vcmask 523264  }
   0xf   :  { %994 = vset.pattern.permute.xlu0 %v1043_v0  ;;  %995 = vset.pattern.permute.xlu1 %v1043_v0  ;;  %v27_v3 = vld [vmem:[%s1300_s0 + $0x8] sm:$0xff]  ;;  %v29_v4 = vld [vmem:[%s1300_s0 + $0x18] sm:$0xff]  ;;  %v62_v6 = vld [vmem:[#allocation2 + $0x30] sm:$0xff]  ;;  %v1044_v57 = vmov 0.0   ;;  %s1045_s0 = smov [#allocation5]  }
  0x10   :  { %33 = vperm.xlu0 %994, %v26_v1   ;;  %39 = vperm.xlu1 %995, %v28_v2   ;;  %v63_v5 = vld [vmem:[#allocation2 + $0x38] sm:$0xff]  ;;  %v1081_v8 = vand.u32 4294901760, %v62_v6  ;;  %v61_v9 = vld [vmem:[#allocation2 + $0x28] sm:$0xff]  ;;  %v60_v10 = vld [vmem:[#allocation2 + $0x20] sm:$0xff]  ;;  %v31_v54 = vand.u32 127, %v30_v53  ;;  %s756_s23 = sshll.u32 %s1045_s0, 4  ;;  %s757_s23 = int_to_ptr.vmem [resolvable:$true] %s756_s23 }
  0x11   :  { %v1079_v7 = vand.u32 4294901760, %v63_v5  ;;  %v59_v11 = vld [vmem:[#allocation2 + $0x18] sm:$0xff]  ;;  %v1083_v12 = vand.u32 4294901760, %v61_v9  ;;  %v1085_v13 = vand.u32 4294901760, %v60_v10  ;;  %v58_v15 = vld [vmem:[#allocation2 + $0x10] sm:$0xff]  ;;  %v57_v16 = vld [vmem:[#allocation2 + $0x8] sm:$0xff]  ;;  %p1021_p6 = scmp.lt.s32.totalorder %s757_s23, %s757_s23 }
  0x12   :  { %v1087_v14 = vand.u32 4294901760, %v59_v11  ;;  %v56_v17 = vld [vmem:[#allocation2] sm:$0xff]  ;;  %v1093_v19 = vsub.f32 %v62_v6, %v1081_v8  ;;  %v1096_v20 = vand.u32 4294901760, %v58_v15  ;;  %v1098_v21 = vand.u32 4294901760, %v57_v16  ;;  %s1016_s24 = scalar_lea.vmem %s757_s23, 512 }
  0x13   :  { %v1090_v18 = vsub.f32 %v63_v5, %v1079_v7  ;;  %856 = vmatprep.subr.mxu0 %v1079_v7  ;;  %v1101_v22 = vsub.f32 %v61_v9, %v1083_v12  ;;  %v1104_v23 = vsub.f32 %v60_v10, %v1085_v13  ;;  %v1109_v25 = vand.u32 4294901760, %v56_v17  ;;  %p1017_p5 = scmp.ne.s32.totalorder %s757_s23, %s1016_s24  ;;  %p1022_p7 = scmp.lt.s32.totalorder %s1016_s24, %s1016_s24 }
  0x14   :  { %36 = vperm.xlu0 %994, %v27_v3   ;;  %42 = vperm.xlu1 %995, %v29_v4   ;;  %v1107_v24 = vsub.f32 %v59_v11, %v1087_v14  ;;  %v1115_v27 = vand.u32 4294901760, %v1093_v19  ;;  %v1119_v28 = vsub.f32 %v58_v15, %v1096_v20  ;;  %v1137_v34 = vsub.f32 %v57_v16, %v1098_v21 }
  0x15   :  { %v1112_v26 = vand.u32 4294901760, %v1090_v18  ;;  %857 = vmatpush3.msra.mxu0 %v1079_v7  ;;  %v1122_v29 = vand.u32 4294901760, %v1101_v22  ;;  %v1125_v30 = vand.u32 4294901760, %v1104_v23  ;;  %v1143_v36 = vsub.f32 %v56_v17, %v1109_v25  ;;  %p1023_p8 = por %p1022_p7, %p1021_p6 }
  0x16   :  { %858 = vmatprep.subr.mxu0 %v1081_v8  ;;  %v217_v32 = vsub.f32 %v1093_v19, %v1115_v27  ;;  %v1133_v33 = vand.u32 4294901760, %v1107_v24  ;;  %v1148_v40 = vand.u32 4294901760, %v1119_v28  ;;  %v1155_v43 = vand.u32 4294901760, %v1137_v34 }
  0x17   :  { %v210_v31 = vsub.f32 %v1090_v18, %v1112_v26  ;;  %859 = vmatpush3.msra.mxu0 %v1081_v8  ;;  %v224_v35 = vsub.f32 %v1101_v22, %v1122_v29  ;;  %v231_v39 = vsub.f32 %v1104_v23, %v1125_v30  ;;  %v1162_v46 = vand.u32 4294901760, %v1143_v36  ;;  %p1024_p9 = pnand %p1023_p8, %p1017_p5 }
  0x18   :  { %860 = vmatprep.subr.mxu0 %v1083_v12  ;;  %v218_v38 = vand.u32 4294901760, %v217_v32  ;;  %v238_v42 = vsub.f32 %v1107_v24, %v1133_v33  ;;  %v245_v45 = vsub.f32 %v1119_v28, %v1148_v40  ;;  %v252_v48 = vsub.f32 %v1137_v34, %v1155_v43 }
  0x19   :  { %v211_v37 = vand.u32 4294901760, %v210_v31  ;;  %861 = vmatpush3.msra.mxu0 %v1083_v12  ;;  %v225_v41 = vand.u32 4294901760, %v224_v35  ;;  %v232_v44 = vand.u32 4294901760, %v231_v39  ;;  %v259_v50 = vsub.f32 %v1143_v36, %v1162_v46 }
  0x1a   :  { %862 = vmatprep.subr.mxu0 %v1085_v13  ;;  %v239_v47 = vand.u32 4294901760, %v238_v42  ;;  %v246_v49 = vand.u32 4294901760, %v245_v45  ;;  %v253_v51 = vand.u32 4294901760, %v252_v48 }
  0x1b   :  { %878 = vmatprep.subr.mxu1 %v211_v37  ;;  %863 = vmatpush3.msra.mxu0 %v1085_v13  ;;  %v260_v52 = vand.u32 4294901760, %v259_v50 }
  0x1c   :  { %879 = vmatpush3.msra.mxu1 %v211_v37  ;;  %864 = vmatprep.subr.mxu0 %v1087_v14 }
  0x1d   :  { %880 = vmatprep.subr.mxu1 %v218_v38  ;;  %865 = vmatpush3.msra.mxu0 %v1087_v14 }
  0x1e   :  { %881 = vmatpush3.msra.mxu1 %v218_v38  ;;  %866 = vmatprep.subr.mxu0 %v1096_v20 }
  0x1f   :  { %882 = vmatprep.subr.mxu1 %v225_v41  ;;  %867 = vmatpush3.msra.mxu0 %v1096_v20 }
  0x20   :  { %883 = vmatpush3.msra.mxu1 %v225_v41  ;;  %868 = vmatprep.subr.mxu0 %v1098_v21 }
  0x21   :  { %884 = vmatprep.subr.mxu1 %v232_v44  ;;  %869 = vmatpush3.msra.mxu0 %v1098_v21 }
  0x22   :  { %885 = vmatpush3.msra.mxu1 %v232_v44  ;;  %870 = vmatprep.subr.mxu0 %v1109_v25 }
  0x23   :  { %886 = vmatprep.subr.mxu1 %v239_v47  ;;  %871 = vmatpush3.msra.mxu0 %v1109_v25 }
  0x24   :  { %887 = vmatpush3.msra.mxu1 %v239_v47  ;;  %900 = vmatprep.subr.mxu0 %v1090_v18 }
  0x25   :  { %888 = vmatprep.subr.mxu1 %v246_v49 }
  0x26   :  { %889 = vmatpush3.msra.mxu1 %v246_v49 }
  0x27   :  { %890 = vmatprep.subr.mxu1 %v253_v51 }
  0x28   :  { %891 = vmatpush3.msra.mxu1 %v253_v51 }
  0x29   :  { %892 = vmatprep.subr.mxu1 %v260_v52 }
  0x2a   :  { %893 = vmatpush3.msra.mxu1 %v260_v52 }
  0x2b   :  { %922 = vmatprep.subr.mxu1 %v1079_v7 }
  0x8b   :  { %v34_v55 = vpop.permute.xlu0 %33  ;;  %v40_v56 = vpop.permute.xlu1 %39 }
  0x8c   :  { %vm44_vm1 = vcmp.eq.s32.totalorder %v34_v55, %v31_v54  ;;  %vm46_vm2 = vcmp.eq.s32.totalorder %v40_v56, %v31_v54 }
  0x8d   :  { %v1177_v58 = vsel %vm44_vm1, 1.0, %v1044_v57  ;;  %v1179_v59 = vsel %vm46_vm2, 1.0, %v1044_v57 }
  0x8e   :  { %894 = vmatprep.mubr.msk.f32.mxu1 %vm64_vm0, %v1177_v58  ;;  %v72_v60 = vsel %vm64_vm0, %v1179_v59, 0  ;;  %v66_v61 = vsel %vm64_vm0, %v1177_v58, 0 }
  0x8f   :  { %v1187_v62 = vsub.f32 %v72_v60, %v72_v60  ;;  %v37_v63 = vpop.permute.xlu0 %36  ;;  %v43_v0 = vpop.permute.xlu1 %42  ;;  %v151_v1 = vsub.f32 %v66_v61, %v66_v61 }
  0x90   :  { %vm45_vm3 = vcmp.eq.s32.totalorder %v37_v63, %v31_v54  ;;  %vm47_vm4 = vcmp.eq.s32.totalorder %v43_v0, %v31_v54 }
  0x91   :  { %v1189_v2 = vsel %vm45_vm3, 1.0, %v1044_v57  ;;  %v1191_v3 = vsel %vm47_vm4, 1.0, %v1044_v57  ;;  %v152_v4 = vand.u32 4294901760, %v151_v1  ;;  %v172_v15 = vand.u32 4294901760, %v1187_v62 }
  0x92   :  { %v69_v5 = vsel %vm64_vm0, %v1189_v2, 0  ;;  %895 = vmatmul.mubr.msk.f32.vlgmr.msra.gmra.mxu1 %vm64_vm0, %v1189_v2  ;;  %v75_v6 = vsel %vm64_vm0, %v1191_v3, 0 }
  0x93   :  { %v1199_v9 = vsub.f32 %v69_v5, %v69_v5  ;;  %923 = vmatpush3.msra.mxu1 %v1079_v7  ;;  %v1202_v10 = vsub.f32 %v75_v6, %v75_v6  ;;  %897 = vmatprep.mubr.msk.f32.mxu1 %vm64_vm0, %v1179_v59  ;;  %v153_v11 = vsub.f32 %v151_v1, %v152_v4 }
  0x94   :  { %924 = vmatprep.subr.mxu1 %v1081_v8  ;;  %v173_v35 = vsub.f32 %v1187_v62, %v172_v15 }
  0x95   :  { %925 = vmatpush3.msra.mxu1 %v1081_v8  ;;  %v154_v16 = vand.u32 4294901760, %v153_v11  ;;  %v162_v17 = vand.u32 4294901760, %v1199_v9  ;;  %v182_v31 = vand.u32 4294901760, %v1202_v10 }
  0x96   :  { %926 = vmatprep.subr.mxu1 %v1083_v12  ;;  %898 = vmatmul.mubr.msk.f32.gmra.mxu1 %vm64_vm0, %v1191_v3  ;;  %v174_v39 = vand.u32 4294901760, %v173_v35 }
  0x97   :  { %927 = vmatpush3.msra.mxu1 %v1083_v12  ;;  %872 = vmatprep.mubr.f32.mxu0 %v154_v16  ;;  %v163_v32 = vsub.f32 %v1199_v9, %v162_v17  ;;  %v183_v37 = vsub.f32 %v1202_v10, %v182_v31 }
  0x98   :  { %928 = vmatprep.subr.mxu1 %v1085_v13  ;;  %938 = vmatprep.mubr.f32.mxu1 %v152_v4 }
  0x99   :  { %929 = vmatpush3.msra.mxu1 %v1085_v13  ;;  %v164_v38 = vand.u32 4294901760, %v163_v32  ;;  %v184_v41 = vand.u32 4294901760, %v183_v37 }
  0x9a   :  { %930 = vmatprep.subr.mxu1 %v1087_v14 }
  0x9b   :  { %931 = vmatpush3.msra.mxu1 %v1087_v14  ;;  %873 = vmatmul.mubr.f32.vlgmr.msra.gmra.mxu0 %v164_v38 }
  0x9c   :  { %901 = vmatpush3.msra.mxu0 %v1090_v18  ;;  %932 = vmatprep.subr.mxu1 %v1096_v20 }
  0x9d   :  { %902 = vmatprep.subr.mxu0 %v1093_v19  ;;  %933 = vmatpush3.msra.mxu1 %v1096_v20 }
  0x9e   :  { %903 = vmatpush3.msra.mxu0 %v1093_v19  ;;  %934 = vmatprep.subr.mxu1 %v1098_v21 }
  0x9f   :  { %875 = vmatprep.mubr.f32.mxu0 %v174_v39  ;;  %904 = vmatprep.subr.mxu0 %v1101_v22 }
  0xa0   :  { %935 = vmatpush3.msra.mxu1 %v1098_v21  ;;  %876 = vmatmul.mubr.f32.gmra.mxu0 %v184_v41 }
  0xa1   :  { %905 = vmatpush3.msra.mxu0 %v1101_v22  ;;  %936 = vmatprep.subr.mxu1 %v1109_v25 }
  0xa2   :  { %906 = vmatprep.subr.mxu0 %v1104_v23  ;;  %916 = vmatprep.mubr.f32.mxu0 %v151_v1 }
  0xa3   :  { %937 = vmatpush3.msra.mxu1 %v1109_v25  ;;  %907 = vmatpush3.msra.mxu0 %v1104_v23 }
  0xa4   :  { %939 = vmatmul.mubr.f32.vlgmr.msra.gmra.mxu1 %v162_v17  ;;  %966 = vmatprep.subr.mxu1 %v1079_v7 }
  0xa5   :  { %908 = vmatprep.subr.mxu0 %v1107_v24  ;;  %941 = vmatprep.mubr.f32.mxu1 %v172_v15 }
  0xa6   :  { %967 = vmatpush3.msra.mxu1 %v1079_v7  ;;  %909 = vmatpush3.msra.mxu0 %v1107_v24 }
  0xa7   :  { %968 = vmatprep.subr.mxu1 %v1081_v8  ;;  %910 = vmatprep.subr.mxu0 %v1119_v28 }
  0xa8   :  { %969 = vmatpush3.msra.mxu1 %v1081_v8  ;;  %911 = vmatpush3.msra.mxu0 %v1119_v28 }
  0xa9   :  { %942 = vmatmul.mubr.f32.gmra.mxu1 %v182_v31  ;;  %970 = vmatprep.subr.mxu1 %v1083_v12 }
  0xaa   :  { %912 = vmatprep.subr.mxu0 %v1137_v34  ;;  %971 = vmatpush3.msra.mxu1 %v1083_v12 }
  0xab   :  { %982 = vmatprep.mubr.msk.f32.mxu1 %vm64_vm0, %v1177_v58  ;;  %913 = vmatpush3.msra.mxu0 %v1137_v34 }
  0xac   :  { %972 = vmatprep.subr.mxu1 %v1085_v13  ;;  %914 = vmatprep.subr.mxu0 %v1143_v36 }
  0xad   :  { %973 = vmatpush3.msra.mxu1 %v1085_v13  ;;  %915 = vmatpush3.msra.mxu0 %v1143_v36 }
  0xae   :  { %974 = vmatprep.subr.mxu1 %v1087_v14  ;;  %917 = vmatmul.mubr.f32.vlgmr.msra.gmra.mxu0 %v1199_v9 }
  0xaf   :  { %944 = vmatprep.subr.mxu0 %v1112_v26  ;;  %975 = vmatpush3.msra.mxu1 %v1087_v14 }
  0xb0   :  { %919 = vmatprep.mubr.f32.mxu0 %v1187_v62  ;;  %945 = vmatpush3.msra.mxu0 %v1112_v26 }
  0xb1   :  { %976 = vmatprep.subr.mxu1 %v1096_v20  ;;  %946 = vmatprep.subr.mxu0 %v1115_v27 }
  0xb2   :  { %977 = vmatpush3.msra.mxu1 %v1096_v20  ;;  %947 = vmatpush3.msra.mxu0 %v1115_v27 }
  0xb3   :  { %978 = vmatprep.subr.mxu1 %v1098_v21  ;;  %920 = vmatmul.mubr.f32.gmra.mxu0 %v1202_v10 }
  0xb4   :  { %948 = vmatprep.subr.mxu0 %v1122_v29  ;;  %979 = vmatpush3.msra.mxu1 %v1098_v21 }
  0xb5   :  { %949 = vmatpush3.msra.mxu0 %v1122_v29  ;;  %960 = vmatprep.mubr.msk.f32.mxu0 %vm64_vm0, %v1177_v58 }
  0xb6   :  { %980 = vmatprep.subr.mxu1 %v1109_v25  ;;  %950 = vmatprep.subr.mxu0 %v1125_v30 }
  0xb7   :  { %981 = vmatpush3.msra.mxu1 %v1109_v25  ;;  %951 = vmatpush3.msra.mxu0 %v1125_v30 }
  0xb8   :  { %983 = vmatmul.mubr.msk.f32.vlgmr.msra.gmra.mxu1 %vm64_vm0, %v1189_v2  ;;  %952 = vmatprep.subr.mxu0 %v1133_v33 }
  0xb9   :  { %985 = vmatprep.mubr.msk.f32.mxu1 %vm64_vm0, %v1179_v59  ;;  %953 = vmatpush3.msra.mxu0 %v1133_v33 }
  0xba   :  { %954 = vmatprep.subr.mxu0 %v1148_v40 }
  0xbb   :  { %955 = vmatpush3.msra.mxu0 %v1148_v40 }
  0xbc   :  { %986 = vmatmul.mubr.msk.f32.gmra.mxu1 %vm64_vm0, %v1191_v3  ;;  %956 = vmatprep.subr.mxu0 %v1155_v43 }
  0xbd   :  { %957 = vmatpush3.msra.mxu0 %v1155_v43 }
  0xbe   :  { %958 = vmatprep.subr.mxu0 %v1162_v46 }
  0xbf   :  { %959 = vmatpush3.msra.mxu0 %v1162_v46 }
  0xc0   :  { %961 = vmatmul.mubr.msk.f32.vlgmr.msra.gmra.mxu0 %vm64_vm0, %v1189_v2 }
  0xc1   :  { %963 = vmatprep.mubr.msk.f32.mxu0 %vm64_vm0, %v1179_v59 }
  0xc4   :  { %964 = vmatmul.mubr.msk.f32.gmra.mxu0 %vm64_vm0, %v1191_v3 }
 0x152   :  { %v896_v7 = vpop.f32.mrf.mxu1 }
 0x154   :  { %v297_v12 = vpop.f32.mrf.mxu1 }
 0x156   :  { %v899_v13 = vpop.f32.mrf.mxu1 }
 0x158   :  { %v309_v18 = vpop.f32.mrf.mxu1 }
 0x15b   :  { %v874_v8 = vpop.f32.mrf.mxu0 }
 0x15c   :  { %v304_v26 = vadd.f32 %v896_v7, %v874_v8 }
 0x15d   :  { %v156_v14 = vpop.f32.mrf.mxu0 }
 0x15e   :  { %v298_v29 = vadd.f32 %v297_v12, %v156_v14 }
 0x160   :  { %v877_v19 = vpop.f32.mrf.mxu0 }
 0x161   :  { %v316_v34 = vadd.f32 %v899_v13, %v877_v19 }
 0x162   :  { %v176_v21 = vpop.f32.mrf.mxu0 }
 0x163   :  { %v310_v42 = vadd.f32 %v309_v18, %v176_v21 }
 0x164   :  { %v940_v20 = vpop.f32.mrf.mxu1 }
 0x166   :  { %v505_v22 = vpop.f32.mrf.mxu1 }
 0x169   :  { %v943_v24 = vpop.f32.mrf.mxu1 }
 0x16b   :  { %v521_v27 = vpop.f32.mrf.mxu1 }
 0x16e   :  { %v918_v23 = vpop.f32.mrf.mxu0 }
 0x16f   :  { %v411_v30 = vadd.f32 %v918_v23, %v304_v26 }
 0x170   :  { %v403_v25 = vpop.f32.mrf.mxu0 }
 0x171   :  { %v404_v36 = vadd.f32 %v403_v25, %v298_v29  ;;  %v514_v44 = vadd.f32 %v940_v20, %v411_v30 }
 0x173   :  { %v921_v28 = vpop.f32.mrf.mxu0  ;;  %v506_v49 = vadd.f32 %v505_v22, %v404_v36 }
 0x174   :  { %v425_v43 = vadd.f32 %v921_v28, %v316_v34 }
 0x175   :  { %v417_v40 = vpop.f32.mrf.mxu0 }
 0x176   :  { %v418_v47 = vadd.f32 %v417_v40, %v310_v42  ;;  %v530_v53 = vadd.f32 %v943_v24, %v425_v43 }
 0x178   :  { %v984_v33 = vpop.f32.mrf.mxu1  ;;  %v522_v59 = vadd.f32 %v521_v27, %v418_v47 }
 0x17a   :  { %v721_v45 = vpop.f32.mrf.mxu1 }
 0x17c   :  { %v987_v54 = vpop.f32.mrf.mxu1 }
 0x17e   :  { %v733_v0 = vpop.f32.mrf.mxu1 }
 0x180   :  { %v962_v46 = vpop.f32.mrf.mxu0 }
 0x181   :  { %v631_v48 = vadd.f32 %v962_v46, %v514_v44 }
 0x182   :  { %v624_v50 = vpop.f32.mrf.mxu0 }
 0x183   :  { %v728_v51 = vadd.f32 %v984_v33, %v631_v48  ;;  %v625_v52 = vadd.f32 %v624_v50, %v506_v49 }
 0x184   :  { %v965_v55 = vpop.f32.mrf.mxu0 }
 0x185   :  { %v744_v56 = vmul.f32 10.0, %v728_v51  ;;  %v722_v57 = vadd.f32 %v721_v45, %v625_v52  ;;  %v643_v58 = vadd.f32 %v965_v55, %v530_v53 }
 0x186   :  { %v636_v60 = vpop.f32.mrf.mxu0 }
 0x187   :  { %748 = vst [vmem:[#allocation5 + $0x8] sm:$0xff] %v744_v56  ;;  %v743_v61 = vmul.f32 10.0, %v722_v57  ;;  %v740_v62 = vadd.f32 %v987_v54, %v643_v58  ;;  %v637_v63 = vadd.f32 %v636_v60, %v522_v59 }
 0x189   :  { %747 = vst [vmem:[#allocation5] sm:$0xff] %v743_v61  ;;  %v746_v1 = vmul.f32 10.0, %v740_v62  ;;  %v734_v2 = vadd.f32 %v733_v0, %v637_v63 }
 0x18b   :  { %750 = vst [vmem:[#allocation5 + $0x18] sm:$0xff] %v746_v1  ;;  %v745_v3 = vmul.f32 10.0, %v734_v2 }
 0x18d   :  { %749 = vst [vmem:[#allocation5 + $0x10] sm:$0xff] %v745_v3 }
 0x18e   :  { %1027 = shalt.err (!%p1024_p9)
}
 0x18f   :  { %762 = dma.vmem_to_hbm [thread:$0]  %s757_s23, 512, %s1302_s2, [#allocation4], %s1041_s12, %s1041_s12, %s1042_s13  }
 0x190   :  { %1038 = dma.done.wait [#allocation4], 512  }
 0x191   :  { %1039 = vsyncadd [#allocation4], 4294966784 }
 0x192   :  { %766 = vsyncpa [#allocation3], 1 }
 0x193   :  { %767 = vsyncpa [#allocation4], 1 }

</bundles_post_ra>
